<compile_context>
chip_gen: v7x
topology: tpu7x:2x2x1
jax: 0.10.0
libtpu: 0.0.40
codegen_flags: <defaults>
</compile_context>

<pallas_src>
import functools

import jax
import jax.numpy as jnp
from jax import lax
from jax.experimental import pallas as pl
from jax.experimental.pallas import tpu as pltpu

REGION_NUM = 8                      # DRConv2d default region_num
_VMEM_LIMIT = 32 * 1024 * 1024      # safe scoped-VMEM request on v5e/v6e/v7x


def _round_up(x, m):
    return ((x + m - 1) // m) * m


def _pick_tile(hw, target=2048):
    """Spatial tile: multiple of 128, capped at `target` (HW is padded up to a
    multiple of the tile in the wrapper, so no divisibility fallback needed)."""
    target = max(128, (target // 128) * 128)
    return min(_round_up(hw, 128), target)


# ---------------------------------------------------------------------------
# Fused kernel: (conv1 ∘ DRConv) per (batch, spatial-tile) block.
#   rgb_ref  : (1, 3, T) f32
#   edge_ref : (1, 1, T) f32
#   wf_ref   : (1, R + R*C, 8) f32   rows = [guide rows (R), region-kernel rows (R*C)]
#                                    cols = [rgb(3), edge(1), bias(1), zeros(3)]
#   out_ref  : (1, C, T) f32
#   xin_buf  : VMEM scratch (8, T) f32 — RHS operand assembled in-kernel.
# ---------------------------------------------------------------------------
def _fused_kernel(rgb_ref, edge_ref, wf_ref, out_ref, xin_buf, *, region_num, c_mid):
    tile = out_ref.shape[2]

    # Assemble the (8, T) RHS: rows 0:3 rgb, row 3 edge, rows 4:8 ones
    # (row 4 pairs with the folded bias column; rows 5:8 hit zero weight columns).
    xin_buf[...] = jnp.ones(xin_buf.shape, xin_buf.dtype)
    xin_buf[0:3, :] = rgb_ref[0]
    xin_buf[3:4, :] = edge_ref[0]

    # One MXU matmul -> guide logits (first R rows) + all R region feature maps.
    big = jnp.dot(wf_ref[0], xin_buf[...],
                  preferred_element_type=jnp.float32)        # (R + R*C, T) f32

    guide = big[0:region_num, :]                             # (R,   T)
    feat = big[region_num:, :]                               # (R*C, T)

    # Per-pixel region = first-occurrence argmax over R (f32 logits, exact ties).
    gmax = jnp.max(guide, axis=0, keepdims=True)             # (1, T)
    r_iota = lax.broadcasted_iota(jnp.int32, guide.shape, 0)  # (R, T)
    region_idx = jnp.min(jnp.where(guide >= gmax, r_iota, region_num),
                         axis=0, keepdims=True)              # (1, T)
    region_b = jnp.broadcast_to(region_idx, (c_mid, tile))   # (C, T), hoisted broadcast

    # Select-in-place over mutually exclusive regions (plain compare + select).
    acc = feat[0:c_mid, :]                                   # region 0 features
    for r in range(1, region_num):
        acc = jnp.where(region_b == r, feat[r * c_mid:(r + 1) * c_mid, :], acc)

    out_ref[0] = acc.astype(out_ref.dtype)


def fused_apply(rgb_f, edge_f, wfused, c_mid, tile):
    B, _, HWp = rgb_f.shape
    R = REGION_NUM
    n_t = HWp // tile
    kernel = functools.partial(_fused_kernel, region_num=R, c_mid=c_mid)
    return pl.pallas_call(
        kernel,
        out_shape=jax.ShapeDtypeStruct((B, c_mid, HWp), jnp.float32),
        grid=(B, n_t),
        in_specs=[
            pl.BlockSpec((1, 3, tile), lambda b, t: (b, 0, t)),          # rgb tile
            pl.BlockSpec((1, 1, tile), lambda b, t: (b, 0, t)),          # edge tile
            pl.BlockSpec((1, R + R * c_mid, 8), lambda b, t: (b, 0, 0)),  # fused weights
        ],
        out_specs=pl.BlockSpec((1, c_mid, tile), lambda b, t: (b, 0, t)),
        scratch_shapes=[pltpu.VMEM((8, tile), jnp.float32)],
        compiler_params=pltpu.CompilerParams(
            dimension_semantics=("parallel", "parallel"),
            vmem_limit_bytes=_VMEM_LIMIT),
    )(rgb_f, edge_f, wfused)


# ---------------------------------------------------------------------------
# Parameter init (deterministic, synthetic) and full forward
# ---------------------------------------------------------------------------
def init_params(key, n_fea_middle, n_fea_in=4):
    C, R = n_fea_middle, REGION_NUM
    ks = jax.random.split(key, 8)
    s = 0.1
    return {
        # conv1: Conv2d(4, C, 1, bias=True)
        "w1": s * jax.random.normal(ks[0], (C, n_fea_in), jnp.float32),
        "b1": s * jax.random.normal(ks[1], (C,), jnp.float32),
        # DRConv.conv_kernel[1]: Conv2d(C, R*R, 1)
        "wk1": s * jax.random.normal(ks[2], (R * R, C), jnp.float32),
        "bk1": s * jax.random.normal(ks[3], (R * R,), jnp.float32),
        # DRConv.conv_kernel[3]: Conv2d(R*R, R*C*C, 1, groups=R) -> weight (R*C*C, R)
        "wk2": s * jax.random.normal(ks[4], (R * C * C, R), jnp.float32),
        "bk2": s * jax.random.normal(ks[5], (R * C * C,), jnp.float32),
        # DRConv.conv_guide: Conv2d(C, R, 1)
        "wg": s * jax.random.normal(ks[6], (R, C), jnp.float32),
        "bg": s * jax.random.normal(ks[7], (R,), jnp.float32),
    }


def edge_aware_feature_extractor(params, rgb, edge, spatial_tile=2048):
    # TODO(synk): depth_conv (5x5 grouped conv) exists in __init__ but is unused in forward -> skipped.
    B, _, H, W = rgb.shape
    C = params["w1"].shape[0]
    R = REGION_NUM
    HW = H * W
    tile = _pick_tile(HW, spatial_tile)
    HWp = _round_up(HW, tile)

    rgb_f = rgb.reshape(B, 3, HW).astype(jnp.float32)
    edge_f = edge.reshape(B, 1, HW).astype(jnp.float32)

    # AdaptiveAvgPool2d(1)(conv1(x_cat)) == conv1(mean(x_cat)) exactly (conv1 is linear).
    pooled_xcat = jnp.concatenate(
        [jnp.mean(rgb_f, axis=2), jnp.mean(edge_f, axis=2)], axis=1)          # (B, 4)
    pooled_x1 = pooled_xcat @ params["w1"].T + params["b1"]                   # (B, C)

    # DRConv dynamic per-batch region kernels (tiny per-batch MLP) — plain JAX glue.
    g = jax.nn.sigmoid(pooled_x1 @ params["wk1"].T + params["bk1"])           # (B, R*R)
    g_grp = g.reshape(B, R, R)
    wk2_grp = params["wk2"].reshape(R, C * C, R)
    ker = jnp.einsum("gji,bgi->bgj", wk2_grp, g_grp) + params["bk2"].reshape(R, C * C)
    ker = ker.reshape(B, R * C, C)                      # rows = (region, c_out), cols = c_in

    # Fold conv1 (and both biases) algebraically into the dynamic kernels / guide conv:
    #   K_r @ (W1 x4 + b1) == (K_r W1) x4 + (K_r b1),  guide likewise.
    w1, b1 = params["w1"], params["b1"]
    ker_w = jnp.einsum("bmc,cf->bmf", ker, w1)                                 # (B, R*C, 4)
    ker_b = jnp.einsum("bmc,c->bm", ker, b1)[..., None]                        # (B, R*C, 1)
    ker8 = jnp.concatenate(
        [ker_w, ker_b, jnp.zeros((B, R * C, 3), jnp.float32)], axis=-1)        # (B, R*C, 8)

    g_w = params["wg"] @ w1                                                    # (R, 4)
    g_b = (params["wg"] @ b1 + params["bg"])[:, None]                          # (R, 1)
    guide8 = jnp.concatenate([g_w, g_b, jnp.zeros((R, 3), jnp.float32)], axis=-1)
    wfused = jnp.concatenate(
        [jnp.broadcast_to(guide8[None], (B, R, 8)), ker8], axis=1
    ).astype(jnp.float32)                                                      # (B, R + R*C, 8)

    # Pad the spatial axis up to a tile multiple (padded pixels are sliced off below).
    pad = HWp - HW
    if pad:
        rgb_f = jnp.pad(rgb_f, ((0, 0), (0, 0), (0, pad)))
        edge_f = jnp.pad(edge_f, ((0, 0), (0, 0), (0, pad)))

    out = fused_apply(rgb_f, edge_f, wfused, C, tile)                          # (B, C, HWp)
    return out[:, :, :HW].reshape(B, C, H, W)


if __name__ == "__main__":
    key = jax.random.PRNGKey(0)
    k_rgb, k_edge, k_par = jax.random.split(key, 3)

    B, H, W = 2, 16, 16
    n_fea_middle = 32

    rgb = jax.random.normal(k_rgb, (B, 3, H, W), jnp.float32)
    edge = jax.random.normal(k_edge, (B, 1, H, W), jnp.float32)
    params = init_params(k_par, n_fea_middle)

    out = edge_aware_feature_extractor(params, rgb, edge)
    out = jax.block_until_ready(out)
    assert out.shape == (B, n_fea_middle, H, W), out.shape
    assert bool(jnp.all(jnp.isfinite(out)))
    print("KERNEL_OK")
</pallas_src>

<mosaic_0001>
module attributes {stable_mosaic.version = 11 : i64} {
  func.func @_fused_kernel(%arg0: i32, %arg1: i32, %arg2: memref<1x3x256xf32, #tpu.memory_space<vmem>>, %arg3: memref<1x1x256xf32, #tpu.memory_space<vmem>>, %arg4: memref<1x264x8xf32, #tpu.memory_space<vmem>>, %arg5: memref<1x32x256xf32, #tpu.memory_space<vmem>>, %arg6: memref<8x256xf32, #tpu.memory_space<vmem>>) attributes {dimension_semantics = [#tpu.dimension_semantics<parallel>, #tpu.dimension_semantics<parallel>], iteration_bounds = array<i64: 2, 1>, scalar_prefetch = 0 : i64, scratch_operands = 1 : i64, tpu.core_type = #tpu.core_type<tc>, window_params = [{transform_indices = @transform_0, window_bounds = array<i64: 1, 3, 256>}, {transform_indices = @transform_1, window_bounds = array<i64: 1, 1, 256>}, {transform_indices = @transform_2, window_bounds = array<i64: 1, 264, 8>}, {transform_indices = @transform_3, window_bounds = array<i64: 1, 32, 256>}]} {
    %cst = arith.constant 1.000000e+00 : f32
    %0 = vector.broadcast %cst : f32 to vector<8x256xf32>
    %c0 = arith.constant 0 : index
    %c0_0 = arith.constant 0 : index
    %1 = vector.load %arg6[%c0, %c0_0] : memref<8x256xf32, #tpu.memory_space<vmem>>, vector<8x256xf32>
    tpu.vector_store %arg6[%c0, %c0_0], %0 {strides = array<i32>} : memref<8x256xf32, #tpu.memory_space<vmem>>, vector<8x256xf32>,
    %c0_1 = arith.constant 0 : index
    %c0_2 = arith.constant 0 : index
    %c0_3 = arith.constant 0 : index
    %2 = vector.load %arg2[%c0_1, %c0_2, %c0_3] : memref<1x3x256xf32, #tpu.memory_space<vmem>>, vector<1x3x256xf32>
    %3 = vector.shape_cast %2 : vector<1x3x256xf32> to vector<3x256xf32>
    %c0_4 = arith.constant 0 : index
    %c0_5 = arith.constant 0 : index
    %4 = vector.load %arg6[%c0_4, %c0_5] : memref<8x256xf32, #tpu.memory_space<vmem>>, vector<3x256xf32>
    tpu.vector_store %arg6[%c0_4, %c0_5], %3 {strides = array<i32>} : memref<8x256xf32, #tpu.memory_space<vmem>>, vector<3x256xf32>,
    %c0_6 = arith.constant 0 : index
    %c0_7 = arith.constant 0 : index
    %c0_8 = arith.constant 0 : index
    %5 = vector.load %arg3[%c0_6, %c0_7, %c0_8] : memref<1x1x256xf32, #tpu.memory_space<vmem>>, vector<1x1x256xf32>
    %6 = vector.shape_cast %5 : vector<1x1x256xf32> to vector<1x256xf32>
    %c3 = arith.constant 3 : index
    %c0_9 = arith.constant 0 : index
    %7 = vector.load %arg6[%c3, %c0_9] : memref<8x256xf32, #tpu.memory_space<vmem>>, vector<1x256xf32>
    tpu.vector_store %arg6[%c3, %c0_9], %6 {strides = array<i32>} : memref<8x256xf32, #tpu.memory_space<vmem>>, vector<1x256xf32>,
    %c0_10 = arith.constant 0 : index
    %c0_11 = arith.constant 0 : index
    %c0_12 = arith.constant 0 : index
    %8 = vector.load %arg4[%c0_10, %c0_11, %c0_12] : memref<1x264x8xf32, #tpu.memory_space<vmem>>, vector<1x264x8xf32>
    %9 = vector.shape_cast %8 : vector<1x264x8xf32> to vector<264x8xf32>
    %c0_13 = arith.constant 0 : index
    %c0_14 = arith.constant 0 : index
    %10 = vector.load %arg6[%c0_13, %c0_14] : memref<8x256xf32, #tpu.memory_space<vmem>>, vector<8x256xf32>
    %cst_15 = arith.constant dense<0.000000e+00> : vector<264x256xf32>
    %11 = tpu.matmul %9, %10, %cst_15 {dimension_numbers = #tpu.dot_dimension_numbers<[1], [0], [0], [1], [0, 0, 1, 1], [], []>} : vector<264x8xf32>, vector<8x256xf32>, vector<264x256xf32> -> vector<264x256xf32>
    %12 = vector.extract_strided_slice %11 {offsets = [0, 0], sizes = [8, 256], strides = [1, 1]} : vector<264x256xf32> to vector<8x256xf32>
    %13 = vector.extract_strided_slice %11 {offsets = [8, 0], sizes = [256, 256], strides = [1, 1]} : vector<264x256xf32> to vector<256x256xf32>
    %cst_16 = arith.constant dense<0xFF800000> : vector<256xf32>
    %14 = vector.multi_reduction <maximumf>, %12, %cst_16 [0] : vector<8x256xf32> to vector<256xf32>
    %15 = vector.shape_cast %14 : vector<256xf32> to vector<1x256xf32>
    %16 = tpu.iota {dimensions = array<i32: 0>} : vector<8x256xi32>
    %17 = vector.broadcast %15 : vector<1x256xf32> to vector<8x256xf32>
    %18 = arith.cmpf oge, %12, %17 : vector<8x256xf32>
    %c8_i32 = arith.constant 8 : i32
    %19 = vector.broadcast %c8_i32 : i32 to vector<8x256xi32>
    %20 = arith.select %18, %16, %19 : vector<8x256xi1>, vector<8x256xi32>
    %cst_17 = arith.constant dense<2147483647> : vector<256xi32>
    %21 = vector.multi_reduction <minsi>, %20, %cst_17 [0] : vector<8x256xi32> to vector<256xi32>
    %22 = vector.shape_cast %21 : vector<256xi32> to vector<1x256xi32>
    %23 = vector.shape_cast %22 : vector<1x256xi32> to vector<1x256xi32>
    %24 = vector.broadcast %23 : vector<1x256xi32> to vector<32x256xi32>
    %25 = vector.extract_strided_slice %13 {offsets = [0, 0], sizes = [32, 256], strides = [1, 1]} : vector<256x256xf32> to vector<32x256xf32>
    %c1_i32 = arith.constant 1 : i32
    %26 = vector.broadcast %c1_i32 : i32 to vector<32x256xi32>
    %27 = arith.cmpi eq, %24, %26 : vector<32x256xi32>
    %28 = vector.extract_strided_slice %13 {offsets = [32, 0], sizes = [32, 256], strides = [1, 1]} : vector<256x256xf32> to vector<32x256xf32>
    %29 = arith.select %27, %28, %25 : vector<32x256xi1>, vector<32x256xf32>
    %c2_i32 = arith.constant 2 : i32
    %30 = vector.broadcast %c2_i32 : i32 to vector<32x256xi32>
    %31 = arith.cmpi eq, %24, %30 : vector<32x256xi32>
    %32 = vector.extract_strided_slice %13 {offsets = [64, 0], sizes = [32, 256], strides = [1, 1]} : vector<256x256xf32> to vector<32x256xf32>
    %33 = arith.select %31, %32, %29 : vector<32x256xi1>, vector<32x256xf32>
    %c3_i32 = arith.constant 3 : i32
    %34 = vector.broadcast %c3_i32 : i32 to vector<32x256xi32>
    %35 = arith.cmpi eq, %24, %34 : vector<32x256xi32>
    %36 = vector.extract_strided_slice %13 {offsets = [96, 0], sizes = [32, 256], strides = [1, 1]} : vector<256x256xf32> to vector<32x256xf32>
    %37 = arith.select %35, %36, %33 : vector<32x256xi1>, vector<32x256xf32>
    %c4_i32 = arith.constant 4 : i32
    %38 = vector.broadcast %c4_i32 : i32 to vector<32x256xi32>
    %39 = arith.cmpi eq, %24, %38 : vector<32x256xi32>
    %40 = vector.extract_strided_slice %13 {offsets = [128, 0], sizes = [32, 256], strides = [1, 1]} : vector<256x256xf32> to vector<32x256xf32>
    %41 = arith.select %39, %40, %37 : vector<32x256xi1>, vector<32x256xf32>
    %c5_i32 = arith.constant 5 : i32
    %42 = vector.broadcast %c5_i32 : i32 to vector<32x256xi32>
    %43 = arith.cmpi eq, %24, %42 : vector<32x256xi32>
    %44 = vector.extract_strided_slice %13 {offsets = [160, 0], sizes = [32, 256], strides = [1, 1]} : vector<256x256xf32> to vector<32x256xf32>
    %45 = arith.select %43, %44, %41 : vector<32x256xi1>, vector<32x256xf32>
    %c6_i32 = arith.constant 6 : i32
    %46 = vector.broadcast %c6_i32 : i32 to vector<32x256xi32>
    %47 = arith.cmpi eq, %24, %46 : vector<32x256xi32>
    %48 = vector.extract_strided_slice %13 {offsets = [192, 0], sizes = [32, 256], strides = [1, 1]} : vector<256x256xf32> to vector<32x256xf32>
    %49 = arith.select %47, %48, %45 : vector<32x256xi1>, vector<32x256xf32>
    %c7_i32 = arith.constant 7 : i32
    %50 = vector.broadcast %c7_i32 : i32 to vector<32x256xi32>
    %51 = arith.cmpi eq, %24, %50 : vector<32x256xi32>
    %52 = vector.extract_strided_slice %13 {offsets = [224, 0], sizes = [32, 256], strides = [1, 1]} : vector<256x256xf32> to vector<32x256xf32>
    %53 = arith.select %51, %52, %49 : vector<32x256xi1>, vector<32x256xf32>
    %c0_18 = arith.constant 0 : index
    %c0_19 = arith.constant 0 : index
    %c0_20 = arith.constant 0 : index
    %54 = vector.load %arg5[%c0_18, %c0_19, %c0_20] : memref<1x32x256xf32, #tpu.memory_space<vmem>>, vector<1x32x256xf32>
    %55 = vector.shape_cast %54 : vector<1x32x256xf32> to vector<32x256xf32>
    %56 = vector.shape_cast %53 : vector<32x256xf32> to vector<1x32x256xf32>
    tpu.vector_store %arg5[%c0_18, %c0_19, %c0_20], %56 {strides = array<i32>} : memref<1x32x256xf32, #tpu.memory_space<vmem>>, vector<1x32x256xf32>,
    return
  }
  func.func @transform_0(%arg0: i32, %arg1: i32) -> (i32, i32, i32) {
    %c0_i32 = arith.constant 0 : i32
    %c0_i32_0 = arith.constant 0 : i32
    return %arg0, %c0_i32, %arg1 : i32, i32, i32
  }
  func.func @transform_1(%arg0: i32, %arg1: i32) -> (i32, i32, i32) {
    %c0_i32 = arith.constant 0 : i32
    %c0_i32_0 = arith.constant 0 : i32
    return %arg0, %c0_i32, %arg1 : i32, i32, i32
  }
  func.func @transform_2(%arg0: i32, %arg1: i32) -> (i32, i32, i32) {
    %c0_i32 = arith.constant 0 : i32
    %c0_i32_0 = arith.constant 0 : i32
    %c0_i32_1 = arith.constant 0 : i32
    return %arg0, %c0_i32, %c0_i32_0 : i32, i32, i32
  }
  func.func @transform_3(%arg0: i32, %arg1: i32) -> (i32, i32, i32) {
    %c0_i32 = arith.constant 0 : i32
    %c0_i32_0 = arith.constant 0 : i32
    return %arg0, %c0_i32, %arg1 : i32, i32, i32
  }
}

</mosaic_0001>

<bundles_post_ra>
// kernel: tpu_custom_call.1
= control target key start
LH: loop header
LB: loop body
LE: loop exit
PB: predicated region body
PF: predicated region fallthrough
CT: control target
= control target key end

     0   :  { %8 = vsyncpa [#allocation4], 0  ;;  %s1546_s0 = inlined_call_operand.vmem [shape: f32[2,3,256], index: 0, kind: input, shape index: {}]   ;;  %s1547_s1 = inlined_call_operand.vmem [shape: f32[2,1,256], index: 1, kind: input, shape index: {}]   ;;  %s1548_s2 = inlined_call_operand.vmem [shape: f32[2,264,8], index: 2, kind: input, shape index: {}]   ;;  %s1549_s3 = inlined_call_operand.hbm [shape: f32[2,32,256], index: 3, kind: output, shape index: {}]  }
   0x1   :  { %10 = vsyncpa [#allocation4 + $0x1], 0  ;;  %s1121_s12 = smov 0   ;;  %s1123_s13 = smov 0  }
   0x2   :  { %s1125_s14 = smov 0   ;;  %s1127_s15 = smov 0  }
   0x3   :  { %s1129_s16 = smov 0   ;;  %s1131_s17 = smov 0  }
   0x4 LB: > { %s903_s18 = sadd.s32 4294967295, %s1094_s17   ;;  %s904_s19 = sadd.s32 4294967294, %s1094_s17   ;;  %s1094_s17 = sphi %s1131_s17, %s16_s17   ;;  %s1090_s16 = sphi %s1129_s16, %s1556_s16   ;;  %s1086_s15 = sphi %s1127_s15, %s1555_s15   ;;  %s1082_s14 = sphi %s1125_s14, %s1554_s14   ;;  %s1078_s13 = sphi %s1123_s13, %s1553_s13   ;;  %s1074_s12 = sphi %s1121_s12, %s1552_s12  }
   0x5   : > { %s28_s20 = sadd.s32 1, %s1090_s16  ;;  %s119_s21 = sadd.s32 1, %s1082_s14 }
   0x6   : > { %p30_p0 = scmp.ge.s32.totalorder %s28_s20, 2  ;;  %p129_p1 = scmp.ne.s32.totalorder %s1082_s14, %s1078_s13 }
   0x7   : > { %p130_p2 = scmp.eq.s32.totalorder %s903_s18, 1  ;;  %p135_p3 = scmp.ne.s32.totalorder %s1078_s13, %s1074_s12 }
   0x8   : > { %s1558_s20 = smov (%p30_p0, %s28_s20), 0  ;;  %p136_p5 = scmp.eq.s32.totalorder %s904_s19, 1 }
   0x9   : > { %p1161_p4 = por %p130_p2, %p129_p1  ;;  %s114_s23 = ssub.s32 %s1090_s16, %s1558_s20 }
   0xa   : > { %p907_p6 = scmp.ge.s32.totalorder %s1094_s17, 1  ;;  %p117_p7 = scmp.eq.s32.totalorder %s114_s23, 0 }
   0xb   : > { %p1168_p8 = por %p136_p5, %p135_p3  ;;  %p187_p9 = scmp.lt.s32.totalorder %s1094_s17, 3 }
   0xc   : > { %s1174_s25 = scalar_select %p117_p7, %s1082_s14, %s119_s21  }
   0xd   : > { %p188_p10 = pnand %p907_p6, %p187_p9 }
   0xe   : > { %p229_p11 = scmp.lt.s32.totalorder (!%p188_p10), %s1086_s15, 1  ;;  %v262_v0 = vlaneseq (!%p188_p10)  ;;  %v1096_v1 = vmov (!%p188_p10), 1.0   ;;  %v1097_v2 = vmov (!%p188_p10), 0.0   ;;  %vm304_vm1 = vcmask (!%p188_p10), 64512   ;;  %s225_s18 = sand.u32 (!%p188_p10), 1, %s1078_s13  }
   0xf   : > { %191 = sbr.rel (%p188_p10) target bundleno = 336 (0x150), region = 32  ;;  %253 = vst [vmem:[#allocation2] sm:$0xff] (!%p188_p10), %v1096_v1  ;;  %254 = vst [vmem:[#allocation2 + $0x8] sm:$0xff] (!%p188_p10), %v1096_v1  ;;  %468 = vmatprep.mubr.f32.mxu0 (!%p188_p10), %v1097_v2  ;;  %570 = vmatprep.mubr.f32.mxu1 (!%p188_p10), %v1097_v2  ;;  %s908_s19 = sshll.u32 (!%p188_p10), %s225_s18, 6 }
  0x10   : > { %vm264_vm0 = vcmp.lt.s32.totalorder (!%p188_p10), %v262_v0, 256  ;;  %v680_v62 = vshrl.u32 (!%p188_p10), %v262_v0, 7  ;;  %s1399_s21 = scalar_lea.vmem (!%p188_p10), [#allocation3], %s908_s19  ;;  %s952_s23 = sshll.u32 (!%p188_p10), %s1086_s15, 10 }
  0x11   : > { %s1500_s29 = scalar_lea.sflag (!%p188_p10), [#allocation4], %s225_s18 }
  0x16   : > { %s230_s26 = scalar_select %p229_p11, %s1086_s15, 1 }
  0x18   : > { %s951_s27 = sshll.u32 %s230_s26, 3  ;;  %s911_s28 = sshll.u32 %s230_s26, 1 }
  0x19   : > { %s236_s4 = scalar_lea.vmem %s1546_s0, %s951_s27  ;;  %s245_s7 = scalar_lea.vmem %s1547_s1, %s911_s28 }
  0x1a   : > { %v255_v3 = vld [vmem:[%s236_s4] sm:$0x77]  ;;  %s955_s8 = smul.u32 264, %s230_s26  ;;  %s797_s26 = sshll.u32 %s1399_s21, 4  ;;  %s1487_s26 = int_to_ptr.vmem [resolvable:$true] %s797_s26 }
  0x1b   : > { %v261_v4 = vld [vmem:[%s245_s7] sm:$0x3]  ;;  %v257_v5 = vcombine.high %v255_v3, %v255_v3  ;;  %259 = vst [vmem:[#allocation2] sm:$0x7] %v255_v3  ;;  %s1485_s28 = scalar_lea.hbm %s1549_s3, %s952_s23  ;;  %s1016_s30 = scalar_lea.vmem %s1487_s26, 1024 }
  0x1c   : > { %267 = vst.msk [vmem:[#allocation2 + $0x3] ss:$8 sm:$0x3] %vm264_vm0, %v261_v4  ;;  %s1190_s11 = scalar_lea.vmem %s1548_s2, %s955_s8  ;;  %p1017_p12 = scmp.ne.s32.totalorder %s1487_s26, %s1016_s30 }
  0x1d   : > { %260 = vst [vmem:[#allocation2 + $0x8] sm:$0x7] %v257_v5  ;;  %v269_v8 = vld [vmem:[%s1190_s11] sm:$0xff]  ;;  %v286_v9 = vld [vmem:[%s1190_s11 + $0x88] sm:$0xff]  ;;  %v287_v11 = vld [vmem:[%s1190_s11 + $0x90] sm:$0xff]  ;;  %s1098_s4 = smov [#allocation3]  }
  0x1e   : > { %v270_v10 = vld [vmem:[%s1190_s11 + $0x8] sm:$0xff]  ;;  %v271_v12 = vld [vmem:[%s1190_s11 + $0x10] sm:$0xff]  ;;  %v288_v13 = vld [vmem:[%s1190_s11 + $0x98] sm:$0xff]  ;;  %p1018_p13 = pnand %p1017_p12, %p1161_p4  ;;  %s1020_s5 = sshll.u32 %s1098_s4, 4  ;;  %s1021_s5 = int_to_ptr.vmem [resolvable:$false] %s1020_s5 }
  0x1f   : > { %v272_v14 = vld [vmem:[%s1190_s11 + $0x18] sm:$0xff]  ;;  %v289_v15 = vld [vmem:[%s1190_s11 + $0xa0] sm:$0xff]  ;;  %v290_v17 = vld [vmem:[%s1190_s11 + $0xa8] sm:$0xff]  ;;  %s1022_s6 = scalar_lea.vmem %s1021_s5, 2048  ;;  %p1023_p1 = scmp.lt.s32.totalorder %s1487_s26, %s1021_s5 }
  0x20   : > { %v273_v16 = vld [vmem:[%s1190_s11 + $0x20] sm:$0xff]  ;;  %v274_v18 = vld [vmem:[%s1190_s11 + $0x28] sm:$0xff]  ;;  %v291_v19 = vld [vmem:[%s1190_s11 + $0xb0] sm:$0xff]  ;;  %p1019_p0 = pneg %p1018_p13  ;;  %p1024_p2 = scmp.lt.s32.totalorder %s1022_s6, %s1016_s30 }
  0x21   : > { %v275_v20 = vld [vmem:[%s1190_s11 + $0x30] sm:$0xff]  ;;  %v292_v21 = vld [vmem:[%s1190_s11 + $0xb8] sm:$0xff]  ;;  %v293_v23 = vld [vmem:[%s1190_s11 + $0xc0] sm:$0xff] }
  0x22   : > { %v276_v22 = vld [vmem:[%s1190_s11 + $0x38] sm:$0xff]  ;;  %v277_v24 = vld [vmem:[%s1190_s11 + $0x40] sm:$0xff]  ;;  %v294_v25 = vld [vmem:[%s1190_s11 + $0xc8] sm:$0xff]  ;;  %p1025_p3 = por %p1024_p2, %p1023_p1 }
  0x23   : > { %v302_v6 = vld [vmem:[#allocation2] sm:$0xff]  ;;  %v278_v26 = vld [vmem:[%s1190_s11 + $0x48] sm:$0xff]  ;;  %v295_v27 = vld [vmem:[%s1190_s11 + $0xd0] sm:$0xff] }
  0x24   : > { %v303_v7 = vld [vmem:[#allocation2 + $0x8] sm:$0xff]  ;;  %v279_v28 = vld [vmem:[%s1190_s11 + $0x50] sm:$0xff]  ;;  %v296_v29 = vld [vmem:[%s1190_s11 + $0xd8] sm:$0xff]  ;;  %p1026_p5 = pnand %p1025_p3, %p1019_p0 }
  0x25   : > { %404 = vmatprep.subr.mxu0 %v303_v7  ;;  %953 = vmatprep.subr.mxu1 %v303_v7  ;;  %v280_v30 = vld [vmem:[%s1190_s11 + $0x58] sm:$0xff]  ;;  %v297_v31 = vld [vmem:[%s1190_s11 + $0xe0] sm:$0xff]  ;;  %v298_v33 = vld [vmem:[%s1190_s11 + $0xe8] sm:$0xff] }
  0x26   : > { %405 = vmatpush1.msra.mxu0 %v302_v6  ;;  %954 = vmatpush1.msra.mxu1 %v302_v6  ;;  %v281_v32 = vld [vmem:[%s1190_s11 + $0x60] sm:$0xff]  ;;  %v282_v34 = vld [vmem:[%s1190_s11 + $0x68] sm:$0xff]  ;;  %v299_v35 = vld [vmem:[%s1190_s11 + $0xf0] sm:$0xff] }
  0x27   : > { %913 = vmatmul.mubr.msk.f32.vlgmr.msra.gmra.mrb[0].mxu0 %vm304_vm1, %v269_v8  ;;  %930 = vmatmul.mubr.msk.f32.vlgmr.msra.gmra.mrb[0].mxu1 %vm304_vm1, %v286_v9  ;;  %v283_v36 = vld [vmem:[%s1190_s11 + $0x70] sm:$0xff]  ;;  %v300_v37 = vld [vmem:[%s1190_s11 + $0xf8] sm:$0xff]  ;;  %v301_v39 = vld [vmem:[%s1190_s11 + $0x100] sm:$0xff] }
  0x28   : > { %474 = vmatprep.mubr.f32.mxu0 %v1097_v2  ;;  %576 = vmatprep.mubr.f32.mxu1 %v1097_v2  ;;  %v284_v38 = vld [vmem:[%s1190_s11 + $0x78] sm:$0xff]  ;;  %v285_v40 = vld [vmem:[%s1190_s11 + $0x80] sm:$0xff] }
  0x2b   : > { %914 = vmatmul.mubr.msk.f32.gmra.mrb[2].mxu0 %vm304_vm1, %v270_v10  ;;  %931 = vmatmul.mubr.msk.f32.gmra.mrb[2].mxu1 %vm304_vm1, %v287_v11 }
  0x2c   : > { %480 = vmatprep.mubr.f32.mxu0 %v1097_v2  ;;  %582 = vmatprep.mubr.f32.mxu1 %v1097_v2 }
  0x2f   : > { %915 = vmatmul.mubr.msk.f32.gmra.mrb[4].mxu0 %vm304_vm1, %v271_v12  ;;  %932 = vmatmul.mubr.msk.f32.gmra.mrb[4].mxu1 %vm304_vm1, %v288_v13 }
  0x30   : > { %486 = vmatprep.mubr.f32.mxu0 %v1097_v2  ;;  %588 = vmatprep.mubr.f32.mxu1 %v1097_v2 }
  0x33   : > { %916 = vmatmul.mubr.msk.f32.gmra.mrb[6].mxu0 %vm304_vm1, %v272_v14  ;;  %933 = vmatmul.mubr.msk.f32.gmra.mrb[6].mxu1 %vm304_vm1, %v289_v15 }
  0x34   : > { %492 = vmatprep.mubr.f32.mxu0 %v1097_v2  ;;  %594 = vmatprep.mubr.f32.mxu1 %v1097_v2 }
  0x37   : > { %917 = vmatmul.mubr.msk.f32.gmra.mrb[8].mxu0 %vm304_vm1, %v273_v16  ;;  %934 = vmatmul.mubr.msk.f32.gmra.mrb[8].mxu1 %vm304_vm1, %v290_v17 }
  0x38   : > { %498 = vmatprep.mubr.f32.mxu0 %v1097_v2  ;;  %600 = vmatprep.mubr.f32.mxu1 %v1097_v2 }
  0x3b   : > { %918 = vmatmul.mubr.msk.f32.gmra.mrb[10].mxu0 %vm304_vm1, %v274_v18  ;;  %935 = vmatmul.mubr.msk.f32.gmra.mrb[10].mxu1 %vm304_vm1, %v291_v19 }
  0x3c   : > { %504 = vmatprep.mubr.f32.mxu0 %v1097_v2  ;;  %606 = vmatprep.mubr.f32.mxu1 %v1097_v2 }
  0x3f   : > { %919 = vmatmul.mubr.msk.f32.gmra.mrb[12].mxu0 %vm304_vm1, %v275_v20  ;;  %936 = vmatmul.mubr.msk.f32.gmra.mrb[12].mxu1 %vm304_vm1, %v292_v21 }
  0x40   : > { %510 = vmatprep.mubr.f32.mxu0 %v1097_v2  ;;  %612 = vmatprep.mubr.f32.mxu1 %v1097_v2 }
  0x43   : > { %920 = vmatmul.mubr.msk.f32.gmra.mrb[14].mxu0 %vm304_vm1, %v276_v22  ;;  %937 = vmatmul.mubr.msk.f32.gmra.mrb[14].mxu1 %vm304_vm1, %v293_v23 }
  0x44   : > { %516 = vmatprep.mubr.f32.mxu0 %v1097_v2  ;;  %618 = vmatprep.mubr.f32.mxu1 %v1097_v2 }
  0x47   : > { %921 = vmatmul.mubr.msk.f32.gmra.mrb[16].mxu0 %vm304_vm1, %v277_v24  ;;  %938 = vmatmul.mubr.msk.f32.gmra.mrb[16].mxu1 %vm304_vm1, %v294_v25 }
  0x48   : > { %522 = vmatprep.mubr.f32.mxu0 %v1097_v2  ;;  %624 = vmatprep.mubr.f32.mxu1 %v1097_v2 }
  0x4b   : > { %922 = vmatmul.mubr.msk.f32.gmra.mrb[18].mxu0 %vm304_vm1, %v278_v26  ;;  %939 = vmatmul.mubr.msk.f32.gmra.mrb[18].mxu1 %vm304_vm1, %v295_v27 }
  0x4c   : > { %528 = vmatprep.mubr.f32.mxu0 %v1097_v2  ;;  %630 = vmatprep.mubr.f32.mxu1 %v1097_v2 }
  0x4f   : > { %923 = vmatmul.mubr.msk.f32.gmra.mrb[20].mxu0 %vm304_vm1, %v279_v28  ;;  %940 = vmatmul.mubr.msk.f32.gmra.mrb[20].mxu1 %vm304_vm1, %v296_v29 }
  0x50   : > { %534 = vmatprep.mubr.f32.mxu0 %v1097_v2  ;;  %636 = vmatprep.mubr.f32.mxu1 %v1097_v2 }
  0x53   : > { %924 = vmatmul.mubr.msk.f32.gmra.mrb[22].mxu0 %vm304_vm1, %v280_v30  ;;  %941 = vmatmul.mubr.msk.f32.gmra.mrb[22].mxu1 %vm304_vm1, %v297_v31 }
  0x54   : > { %540 = vmatprep.mubr.f32.mxu0 %v1097_v2  ;;  %642 = vmatprep.mubr.f32.mxu1 %v1097_v2 }
  0x57   : > { %925 = vmatmul.mubr.msk.f32.gmra.mrb[24].mxu0 %vm304_vm1, %v281_v32  ;;  %942 = vmatmul.mubr.msk.f32.gmra.mrb[24].mxu1 %vm304_vm1, %v298_v33 }
  0x58   : > { %546 = vmatprep.mubr.f32.mxu0 %v1097_v2  ;;  %648 = vmatprep.mubr.f32.mxu1 %v1097_v2 }
  0x5b   : > { %926 = vmatmul.mubr.msk.f32.gmra.mrb[26].mxu0 %vm304_vm1, %v282_v34  ;;  %943 = vmatmul.mubr.msk.f32.gmra.mrb[26].mxu1 %vm304_vm1, %v299_v35 }
  0x5c   : > { %552 = vmatprep.mubr.f32.mxu0 %v1097_v2  ;;  %654 = vmatprep.mubr.f32.mxu1 %v1097_v2 }
  0x5f   : > { %927 = vmatmul.mubr.msk.f32.gmra.mrb[28].mxu0 %vm304_vm1, %v283_v36  ;;  %944 = vmatmul.mubr.msk.f32.gmra.mrb[28].mxu1 %vm304_vm1, %v300_v37 }
  0x60   : > { %558 = vmatprep.mubr.f32.mxu0 %v1097_v2  ;;  %660 = vmatprep.mubr.f32.mxu1 %v1097_v2 }
  0x63   : > { %928 = vmatmul.mubr.msk.f32.gmra.mrb[30].mxu0 %vm304_vm1, %v284_v38  ;;  %945 = vmatmul.mubr.msk.f32.gmra.mrb[30].mxu1 %vm304_vm1, %v301_v39 }
  0x64   : > { %564 = vmatprep.mubr.f32.mxu0 %v1097_v2 }
  0x67   : > { %929 = vmatmul.mubr.msk.f32.gmra.mrb[32].mxu0 %vm304_vm1, %v285_v40 }
  0xfa   : > { %v470_v41 = vpop.f32.mrb[0].mxu0  ;;  %v1289_v42 = vpop.f32.mrb[0].mxu1 }
  0xfb   : > { %v667_v43 = vrot.slane %v470_v41, 4  ;;  %v472_v44 = vpop.f32.mrb[1].mxu0  ;;  %v1291_v45 = vpop.f32.mrb[1].mxu1 }
  0xfc   : > { %v673_v46 = vrot.slane %v472_v44, 4 }
  0xfd   : > { %v668_v47 = vmax.f32 %v470_v41, %v667_v43 }
  0xfe   : > { %v674_v48 = vmax.f32 %v472_v44, %v673_v46  ;;  %v476_v49 = vpop.f32.mrb[2].mxu0  ;;  %v1293_v50 = vpop.f32.mrb[2].mxu1 }
  0xff   : > { %v669_v51 = vrot.slane %v668_v47, 2  ;;  %v478_v52 = vpop.f32.mrb[3].mxu0  ;;  %v1295_v53 = vpop.f32.mrb[3].mxu1 }
 0x100   : > { %v675_v54 = vrot.slane %v674_v48, 2 }
 0x101   : > { %v670_v55 = vmax.f32 %v668_v47, %v669_v51 }
 0x102   : > { %v676_v56 = vmax.f32 %v674_v48, %v675_v54  ;;  %v482_v57 = vpop.f32.mrb[4].mxu0  ;;  %v1297_v58 = vpop.f32.mrb[4].mxu1 }
 0x103   : > { %v671_v59 = vrot.slane %v670_v55, 1  ;;  %v484_v60 = vpop.f32.mrb[5].mxu0  ;;  %v1299_v61 = vpop.f32.mrb[5].mxu1 }
 0x104   : > { %v677_v63 = vrot.slane %v676_v56, 1 }
 0x105   : > { %v672_v1 = vmax.f32 %v670_v55, %v671_v59 }
 0x106   : > { %v678_v2 = vmax.f32 %v676_v56, %v677_v63  ;;  %v488_v3 = vpop.f32.mrb[6].mxu0  ;;  %v1302_v4 = vpop.f32.mrb[6].mxu1 }
 0x107   : > { %vm681_vm2 = vcmp.ge.f32.partialorder %v470_v41, %v672_v1  ;;  %v490_v5 = vpop.f32.mrb[7].mxu0  ;;  %v1304_v6 = vpop.f32.mrb[7].mxu1 }
 0x108   : > { %v683_v7 = vsel %vm681_vm2, %v680_v62, 8  ;;  %vm682_vm3 = vcmp.ge.f32.partialorder %v472_v44, %v678_v2 }
 0x109   : > { %v685_v8 = vrot.slane %v683_v7, 4  ;;  %v684_v9 = vsel %vm682_vm3, %v680_v62, 8 }
 0x10a   : > { %v694_v10 = vrot.slane %v684_v9, 4  ;;  %v494_v11 = vpop.f32.mrb[8].mxu0  ;;  %v1306_v12 = vpop.f32.mrb[8].mxu1 }
 0x10b   : > { %vm686_vm4 = vcmp.lt.s32.totalorder %v683_v7, %v685_v8  ;;  %v496_v0 = vpop.f32.mrb[9].mxu0  ;;  %v1308_v13 = vpop.f32.mrb[9].mxu1 }
 0x10c   : > { %v687_v14 = vsel %vm686_vm4, %v683_v7, %v685_v8  ;;  %vm695_vm5 = vcmp.lt.s32.totalorder %v684_v9, %v694_v10 }
 0x10d   : > { %v688_v15 = vrot.slane %v687_v14, 2  ;;  %v696_v16 = vsel %vm695_vm5, %v684_v9, %v694_v10 }
 0x10e   : > { %v697_v17 = vrot.slane %v696_v16, 2  ;;  %v500_v18 = vpop.f32.mrb[10].mxu0  ;;  %v1310_v19 = vpop.f32.mrb[10].mxu1 }
 0x10f   : > { %vm689_vm6 = vcmp.lt.s32.totalorder %v687_v14, %v688_v15  ;;  %v502_v20 = vpop.f32.mrb[11].mxu0  ;;  %v1312_v21 = vpop.f32.mrb[11].mxu1 }
 0x110   : > { %v690_v22 = vsel %vm689_vm6, %v687_v14, %v688_v15  ;;  %vm698_vm7 = vcmp.lt.s32.totalorder %v696_v16, %v697_v17 }
 0x111   : > { %v691_v23 = vrot.slane %v690_v22, 1  ;;  %v699_v24 = vsel %vm698_vm7, %v696_v16, %v697_v17 }
 0x112   : > { %v700_v25 = vrot.slane %v699_v24, 1  ;;  %v506_v26 = vpop.f32.mrb[12].mxu0  ;;  %v1314_v27 = vpop.f32.mrb[12].mxu1 }
 0x113   : > { %vm692_vm8 = vcmp.lt.s32.totalorder %v690_v22, %v691_v23  ;;  %v508_v28 = vpop.f32.mrb[13].mxu0  ;;  %v1316_v29 = vpop.f32.mrb[13].mxu1 }
 0x114   : > { %v1318_v30 = vsel %vm692_vm8, %v690_v22, %v691_v23  ;;  %vm701_vm9 = vcmp.lt.s32.totalorder %v699_v24, %v700_v25 }
 0x115   : > { %v1320_v31 = vsel %vm701_vm9, %v699_v24, %v700_v25  ;;  %vm703_vm10 = vcmp.eq.s32.totalorder %v1318_v30, 1  ;;  %vm713_vm12 = vcmp.eq.s32.totalorder %v1318_v30, 2  ;;  %vm723_vm14 = vcmp.eq.s32.totalorder %v1318_v30, 3 }
 0x116   : > { %v705_v32 = vsel %vm703_vm10, %v500_v18, %v476_v49  ;;  %vm704_vm11 = vcmp.eq.s32.totalorder %v1320_v31, 1  ;;  %v707_v33 = vsel %vm703_vm10, %v506_v26, %v482_v57  ;;  %v512_v34 = vpop.f32.mrb[14].mxu0  ;;  %v1324_v35 = vpop.f32.mrb[14].mxu1  ;;  %vm714_vm13 = vcmp.eq.s32.totalorder %v1320_v31, 2 }
 0x117   : > { %v706_v36 = vsel %vm704_vm11, %v502_v20, %v478_v52  ;;  %v708_v37 = vsel %vm704_vm11, %v508_v28, %v484_v60  ;;  %v709_v38 = vsel %vm703_vm10, %v512_v34, %v488_v3  ;;  %v514_v39 = vpop.f32.mrb[15].mxu0  ;;  %v1326_v40 = vpop.f32.mrb[15].mxu1  ;;  %vm733_vm15 = vcmp.eq.s32.totalorder %v1318_v30, 4 }
 0x118   : > { %v710_v41 = vsel %vm704_vm11, %v514_v39, %v490_v5  ;;  %vm724_vm0 = vcmp.eq.s32.totalorder %v1320_v31, 3  ;;  %vm734_vm1 = vcmp.eq.s32.totalorder %v1320_v31, 4  ;;  %vm743_vm2 = vcmp.eq.s32.totalorder %v1318_v30, 5 }
 0x119   : > { %vm753_vm3 = vcmp.eq.s32.totalorder %v1318_v30, 6  ;;  %vm744_vm4 = vcmp.eq.s32.totalorder %v1320_v31, 5  ;;  %vm763_vm5 = vcmp.eq.s32.totalorder %v1318_v30, 7  ;;  %vm754_vm6 = vcmp.eq.s32.totalorder %v1320_v31, 6 }
 0x11a   : > { %v518_v43 = vpop.f32.mrb[16].mxu0  ;;  %v620_v44 = vpop.f32.mrb[16].mxu1  ;;  %vm764_vm7 = vcmp.eq.s32.totalorder %v1320_v31, 7 }
 0x11b   : > { %v711_v46 = vsel %vm703_vm10, %v518_v43, %v494_v11  ;;  %v520_v47 = vpop.f32.mrb[17].mxu0  ;;  %v622_v48 = vpop.f32.mrb[17].mxu1 }
 0x11c   : > { %v712_v51 = vsel %vm704_vm11, %v520_v47, %v496_v0 }
 0x11e   : > { %v524_v49 = vpop.f32.mrb[18].mxu0  ;;  %v1329_v54 = vpop.f32.mrb[18].mxu1 }
 0x11f   : > { %v715_v52 = vsel %vm713_vm12, %v524_v49, %v705_v32  ;;  %v526_v55 = vpop.f32.mrb[19].mxu0  ;;  %v1334_v56 = vpop.f32.mrb[19].mxu1 }
 0x120   : > { %v716_v57 = vsel %vm714_vm13, %v526_v55, %v706_v36 }
 0x122   : > { %v530_v59 = vpop.f32.mrb[20].mxu0  ;;  %v1338_v60 = vpop.f32.mrb[20].mxu1 }
 0x123   : > { %v717_v62 = vsel %vm713_vm12, %v530_v59, %v707_v33  ;;  %v532_v63 = vpop.f32.mrb[21].mxu0  ;;  %v1342_v1 = vpop.f32.mrb[21].mxu1 }
 0x124   : > { %v718_v2 = vsel %vm714_vm13, %v532_v63, %v708_v37 }
 0x126   : > { %v536_v3 = vpop.f32.mrb[22].mxu0  ;;  %v1346_v5 = vpop.f32.mrb[22].mxu1 }
 0x127   : > { %v719_v7 = vsel %vm713_vm12, %v536_v3, %v709_v38  ;;  %v538_v8 = vpop.f32.mrb[23].mxu0  ;;  %v1350_v9 = vpop.f32.mrb[23].mxu1 }
 0x128   : > { %v720_v10 = vsel %vm714_vm13, %v538_v8, %v710_v41 }
 0x12a   : > { %v542_v11 = vpop.f32.mrb[24].mxu0  ;;  %v644_v0 = vpop.f32.mrb[24].mxu1 }
 0x12b   : > { %v1356_v14 = vsel %vm713_vm12, %v542_v11, %v711_v46  ;;  %v544_v15 = vpop.f32.mrb[25].mxu0  ;;  %v646_v16 = vpop.f32.mrb[25].mxu1 }
 0x12c   : > { %v1361_v17 = vsel %vm714_vm13, %v544_v15, %v712_v51 }
 0x12e   : > { %v548_v18 = vpop.f32.mrb[26].mxu0  ;;  %v650_v20 = vpop.f32.mrb[26].mxu1 }
 0x12f   : > { %v725_v22 = vsel %vm723_vm14, %v548_v18, %v715_v52  ;;  %v550_v23 = vpop.f32.mrb[27].mxu0  ;;  %v652_v24 = vpop.f32.mrb[27].mxu1 }
 0x130   : > { %v735_v25 = vsel %vm733_vm15, %v1289_v42, %v725_v22  ;;  %v726_v26 = vsel %vm724_vm0, %v550_v23, %v716_v57 }
 0x131   : > { %v736_v28 = vsel %vm734_vm1, %v1291_v45, %v726_v26  ;;  %v745_v32 = vsel %vm743_vm2, %v1306_v12, %v735_v25 }
 0x132   : > { %v755_v42 = vsel %vm753_vm3, %v620_v44, %v745_v32  ;;  %v554_v33 = vpop.f32.mrb[28].mxu0  ;;  %v746_v34 = vsel %vm744_vm4, %v1308_v13, %v736_v28  ;;  %v656_v45 = vpop.f32.mrb[28].mxu1 }
 0x133   : > { %v765_v12 = vsel %vm763_vm5, %v644_v0, %v755_v42  ;;  %v727_v36 = vsel %vm723_vm14, %v554_v33, %v717_v62  ;;  %v756_v37 = vsel %vm754_vm6, %v622_v48, %v746_v34  ;;  %v556_v38 = vpop.f32.mrb[29].mxu0  ;;  %v658_v39 = vpop.f32.mrb[29].mxu1 }
 0x134   : > { %773 = vst [vmem:[%s1399_s21] sm:$0xff] %v765_v12  ;;  %v737_v13 = vsel %vm733_vm15, %v1293_v50, %v727_v36  ;;  %v766_v41 = vsel %vm764_vm7, %v646_v16, %v756_v37  ;;  %v728_v43 = vsel %vm724_vm0, %v556_v38, %v718_v2 }
 0x135   : > { %774 = vst [vmem:[%s1399_s21 + $0x8] sm:$0xff] %v766_v41  ;;  %v738_v44 = vsel %vm734_vm1, %v1295_v53, %v728_v43  ;;  %v747_v46 = vsel %vm743_vm2, %v1310_v19, %v737_v13 }
 0x136   : > { %v757_v50 = vsel %vm753_vm3, %v1329_v54, %v747_v46  ;;  %v560_v47 = vpop.f32.mrb[30].mxu0  ;;  %v748_v48 = vsel %vm744_vm4, %v1312_v21, %v738_v44  ;;  %v662_v51 = vpop.f32.mrb[30].mxu1 }
 0x137   : > { %v767_v49 = vsel %vm763_vm5, %v650_v20, %v757_v50  ;;  %v729_v53 = vsel %vm723_vm14, %v560_v47, %v719_v7  ;;  %v758_v19 = vsel %vm754_vm6, %v1334_v56, %v748_v48  ;;  %v562_v52 = vpop.f32.mrb[31].mxu0  ;;  %v664_v55 = vpop.f32.mrb[31].mxu1 }
 0x138   : > { %775 = vst [vmem:[%s1399_s21 + $0x10] sm:$0xff] %v767_v49  ;;  %v739_v21 = vsel %vm733_vm15, %v1297_v58, %v729_v53  ;;  %v768_v54 = vsel %vm764_vm7, %v652_v24, %v758_v19  ;;  %v730_v57 = vsel %vm724_vm0, %v562_v52, %v720_v10 }
 0x139   : > { %776 = vst [vmem:[%s1399_s21 + $0x18] sm:$0xff] %v768_v54  ;;  %v740_v56 = vsel %vm734_vm1, %v1299_v61, %v730_v57  ;;  %v749_v59 = vsel %vm743_vm2, %v1314_v27, %v739_v21 }
 0x13a   : > { %v759_v58 = vsel %vm753_vm3, %v1338_v60, %v749_v59  ;;  %v566_v62 = vpop.f32.mrb[32].mxu0  ;;  %v750_v63 = vsel %vm744_vm4, %v1316_v29, %v740_v56 }
 0x13b   : > { %v769_v2 = vsel %vm763_vm5, %v656_v45, %v759_v58  ;;  %v731_v61 = vsel %vm723_vm14, %v566_v62, %v1356_v14  ;;  %v760_v27 = vsel %vm754_vm6, %v1342_v1, %v750_v63  ;;  %v568_v3 = vpop.f32.mrb[33].mxu0 }
 0x13c   : > { %777 = vst [vmem:[%s1399_s21 + $0x20] sm:$0xff] %v769_v2  ;;  %v741_v29 = vsel %vm733_vm15, %v1302_v4, %v731_v61  ;;  %v770_v60 = vsel %vm764_vm7, %v658_v39, %v760_v27  ;;  %v732_v7 = vsel %vm724_vm0, %v568_v3, %v1361_v17 }
 0x13d   : > { %778 = vst [vmem:[%s1399_s21 + $0x28] sm:$0xff] %v770_v60  ;;  %v742_v1 = vsel %vm734_vm1, %v1304_v6, %v732_v7  ;;  %v751_v8 = vsel %vm743_vm2, %v1324_v35, %v741_v29 }
 0x13e   : > { %v761_v4 = vsel %vm753_vm3, %v1346_v5, %v751_v8  ;;  %v752_v10 = vsel %vm744_vm4, %v1326_v40, %v742_v1 }
 0x13f   : > { %v771_v6 = vsel %vm763_vm5, %v662_v51, %v761_v4  ;;  %v762_v35 = vsel %vm754_vm6, %v1350_v9, %v752_v10 }
 0x140   : > { %779 = vst [vmem:[%s1399_s21 + $0x30] sm:$0xff] %v771_v6  ;;  %v772_v40 = vsel %vm764_vm7, %v664_v55, %v762_v35 }
 0x141   : > { %780 = vst [vmem:[%s1399_s21 + $0x38] sm:$0xff] %v772_v40 }
 0x142   : > { %1029 = shalt.err (!%p1026_p5)
}
 0x143   : > { %s1030_s7 = scalar_lea.hbm %s1485_s28, 1024  ;;  %s1034_s10 = scalar_lea.hbm %s1549_s3, 2048 }
 0x144   : > { %p1031_p6 = scmp.ne.s32.totalorder %s1485_s28, %s1030_s7  ;;  %p1035_p10 = scmp.lt.u32.totalorder %s1485_s28, %s1549_s3 }
 0x145   : > { %p1036_p11 = scmp.lt.u32.totalorder %s1034_s10, %s1030_s7  ;;  %p1038_p13 = scmp.lt.u32.totalorder %s1030_s7, %s1485_s28 }
 0x146   : > { %p1032_p7 = pnand %p1031_p6, %p1161_p4 }
 0x147   : > { %p1037_p12 = por %p1036_p11, %p1035_p10 }
 0x148   : > { %p1033_p9 = pneg %p1032_p7 }
 0x149   : > { %p1039_p0 = por %p1038_p13, %p1037_p12 }
 0x14b   : > { %p1040_p1 = pnand %p1039_p0, %p1033_p9 }
 0x14d   : > { %1043 = shalt.err (!%p1040_p1)
}
 0x14e   : > { %s1099_s19 = smov 256   ;;  %s1100_s21 = smov 16  }
 0x14f   : > { %956 = dma.vmem_to_hbm [thread:$0]  (%p1161_p4), %s1487_s26, 1024, %s1485_s28, %s1500_s29, %s1099_s19, %s1099_s19, %s1100_s21  }
 0x150 PF: > { %p962_p2 = scmp.ge.s32.totalorder %s1094_s17, 2  ;;  %s812_s23 = sand.u32 1, %s1074_s12  }
 0x151   : > { %s813_s15 = scalar_lea.sflag [#allocation4], %s812_s23 }
 0x152   : > { %p959_p3 = pnand %p962_p2, %p1168_p8 }
 0x154   : > { %1069 = dma.done.wait (!%p959_p3), %s813_s15, 1024  }
 0x155   : > { %1071 = vsyncadd (!%p959_p3), %s813_s15, 4294966272  ;;  %s16_s17 = sadd.s32 1, %s1094_s17   ;;  %s1552_s12 = smov %s1078_s13 }
 0x156   : > { %p13_p5 = scmp.ge.s32.totalorder %s16_s17, 4   ;;  %s1553_s13 = smov %s1082_s14 }
 0x157   : > { %s1554_s14 = smov %s1174_s25  ;;  %s1555_s15 = smov %s1090_s16 }
 0x158   : > { %s1556_s16 = smov %s1558_s20  ;;  %15 = sbr.rel (!%p13_p5) target bundleno = 4 (0x4), region = 74 }
 0x15f   :  { %818 = vsyncpa [#allocation4], 1 }
 0x160   :  { %820 = vsyncpa [#allocation4 + $0x1], 1 }

</bundles_post_ra>
